<compile_context>
chip_gen: v5e
topology: v5e:2x2
jax: 0.10.0
libtpu: 0.0.40
codegen_flags: <defaults>
</compile_context>

<pallas_src>
import functools

import jax
import jax.numpy as jnp
from jax import lax
from jax.experimental import pallas as pl
from jax.experimental.pallas import tpu as pltpu

_MiB = 1024 * 1024


def _round_up(x: int, m: int) -> int:
    return ((x + m - 1) // m) * m


def _vmem_capacity_bytes() -> int:
    try:
        return int(pltpu.get_tpu_info().vmem_capacity_bytes)
    except Exception:
        return 64 * _MiB


_VMEM_CAP = _vmem_capacity_bytes()
# Fully-resident fast path budget (generation-specific; accounts for the 2x
# pipeline buffering of every operand at grid=(1,)).
_RESIDENT_LIMIT = int(_VMEM_CAP * 0.72)
# Scoped VMEM limit handed to the tiled calls.
_TILED_LIMIT = min(64 * _MiB, int(_VMEM_CAP * 0.5))


# ----------------------------------------------------------------------------
# Propagation kernels:  itemEmbds <- mAdj @ itemEmbds, repeated num_layers times
# ----------------------------------------------------------------------------
def _propagate_resident_kernel(adj_ref, x_ref, o_ref, *, num_layers: int):
    """Fast path: adj fully VMEM-resident across all layers (1x adj HBM read)."""
    adj = adj_ref[...]                                   # bf16 tile

    def body(_, x_cur):                                  # f32 carry
        return jnp.dot(adj, x_cur.astype(adj.dtype),
                       preferred_element_type=jnp.float32)

    o_ref[...] = lax.fori_loop(0, num_layers, body, x_ref[...].astype(jnp.float32))


def _propagate_rows_kernel(adj_ref, x_ref, o_ref):
    """One layer, K axis collapsed: (tile_m, n_pad) adj block @ resident x."""
    o_ref[...] = jnp.dot(adj_ref[...], x_ref[...],
                         preferred_element_type=jnp.float32).astype(o_ref.dtype)


def _propagate_reduce_kernel(adj_ref, x_ref, o_ref, acc_ref):
    """One layer, tiled reduction over K with an f32 VMEM accumulator."""
    @pl.when(pl.program_id(1) == 0)
    def _():
        acc_ref[...] = jnp.zeros_like(acc_ref)

    acc_ref[...] += jnp.dot(adj_ref[...], x_ref[...],
                            preferred_element_type=jnp.float32)

    @pl.when(pl.program_id(1) == pl.num_programs(1) - 1)
    def _():
        o_ref[...] = acc_ref[...].astype(o_ref.dtype)


def _propagate_resident(adj: jax.Array, x: jax.Array, num_layers: int) -> jax.Array:
    n, d = x.shape
    adj_bytes = adj.size * adj.dtype.itemsize
    return pl.pallas_call(
        functools.partial(_propagate_resident_kernel, num_layers=num_layers),
        out_shape=jax.ShapeDtypeStruct((n, d), jnp.float32),
        grid=(1,),
        in_specs=[
            pl.BlockSpec((n, n), lambda i: (0, 0)),
            pl.BlockSpec((n, d), lambda i: (0, 0)),
        ],
        out_specs=pl.BlockSpec((n, d), lambda i: (0, 0)),
        compiler_params=pltpu.CompilerParams(
            vmem_limit_bytes=_RESIDENT_LIMIT + 4 * _MiB),
        cost_estimate=pl.CostEstimate(
            flops=2 * num_layers * n * n * d,
            transcendentals=0,
            bytes_accessed=adj_bytes + 2 * n * d * 4,
        ),
    )(adj, x)


def _pick_rows_tile_m(n: int, d: int, adj_itemsize: int) -> int | None:
    """Largest row tile whose (tile_m, n_pad) adj block (+x, +out) fits VMEM."""
    for require_two_tiles in (True, False):
        for tm in (1024, 512, 256, 128):
            n_pad = _round_up(n, tm)
            if require_two_tiles and n_pad // tm < 2:
                continue
            foot = (2 * tm * n_pad * adj_itemsize          # adj block, double-buffered
                    + 2 * n_pad * d * adj_itemsize         # resident x (bf16 carry)
                    + 2 * tm * d * 4                       # out block
                    + 2 * _MiB)                            # headroom
            if foot <= _TILED_LIMIT:
                return tm
    return None


def _propagate_rows(adj: jax.Array, x: jax.Array, num_layers: int,
                    tile_m: int) -> jax.Array:
    n, d = x.shape
    n_pad = _round_up(n, tile_m)
    if n_pad != n:   # zero padding keeps adj @ x exact
        adj = jnp.pad(adj, ((0, n_pad - n), (0, n_pad - n)))
        x = jnp.pad(x, ((0, n_pad - n), (0, 0)))

    grid = (n_pad // tile_m,)

    def make_step(out_dtype):
        return pl.pallas_call(
            _propagate_rows_kernel,
            out_shape=jax.ShapeDtypeStruct((n_pad, d), out_dtype),
            grid_spec=pltpu.PrefetchScalarGridSpec(
                num_scalar_prefetch=0,
                grid=grid,
                in_specs=[
                    pl.BlockSpec((tile_m, n_pad), lambda i: (i, 0)),
                    pl.BlockSpec((n_pad, d), lambda i: (0, 0)),
                ],
                out_specs=pl.BlockSpec((tile_m, d), lambda i: (i, 0)),
            ),
            compiler_params=pltpu.CompilerParams(
                dimension_semantics=("parallel",),
                vmem_limit_bytes=_TILED_LIMIT,
            ),
            cost_estimate=pl.CostEstimate(
                flops=2 * n_pad * n_pad * d,
                transcendentals=0,
                bytes_accessed=(n_pad * n_pad * adj.dtype.itemsize
                                + n_pad * d * adj.dtype.itemsize
                                + n_pad * d * jnp.dtype(out_dtype).itemsize),
            ),
        )

    step_mid = make_step(adj.dtype)        # bf16 intermediate activations
    step_last = make_step(jnp.float32)

    out = x.astype(adj.dtype)              # bf16 carry (matches per-layer rounding)
    for layer in range(num_layers):
        out = (step_last if layer == num_layers - 1 else step_mid)(adj, out)
    return out[:n] if n_pad != n else out


def _propagate_reduce(adj: jax.Array, x: jax.Array, num_layers: int,
                      tile_m: int, tile_k: int) -> jax.Array:
    n, d = x.shape
    tile_m = max(128, min(tile_m, _round_up(n, 128)))
    tile_k = max(128, min(tile_k, _round_up(n, 128)))
    n_pad = _round_up(n, max(tile_m, tile_k))   # tiles are power-of-two x 128
    if n_pad != n:
        adj = jnp.pad(adj, ((0, n_pad - n), (0, n_pad - n)))
        x = jnp.pad(x, ((0, n_pad - n), (0, 0)))

    grid = (n_pad // tile_m, n_pad // tile_k)   # reduction axis last

    def make_step(out_dtype):
        return pl.pallas_call(
            _propagate_reduce_kernel,
            out_shape=jax.ShapeDtypeStruct((n_pad, d), out_dtype),
            grid_spec=pltpu.PrefetchScalarGridSpec(
                num_scalar_prefetch=0,
                grid=grid,
                in_specs=[
                    pl.BlockSpec((tile_m, tile_k), lambda i, k: (i, k)),
                    pl.BlockSpec((tile_k, d), lambda i, k: (k, 0)),
                ],
                out_specs=pl.BlockSpec((tile_m, d), lambda i, k: (i, 0)),
                scratch_shapes=[pltpu.VMEM((tile_m, d), jnp.float32)],
            ),
            compiler_params=pltpu.CompilerParams(
                dimension_semantics=("parallel", "arbitrary"),
                vmem_limit_bytes=_TILED_LIMIT,
            ),
            cost_estimate=pl.CostEstimate(
                flops=2 * n_pad * n_pad * d,
                transcendentals=0,
                bytes_accessed=(n_pad * n_pad * adj.dtype.itemsize
                                + (n_pad // tile_m) * n_pad * d * adj.dtype.itemsize
                                + n_pad * d * jnp.dtype(out_dtype).itemsize),
            ),
        )

    step_mid = make_step(adj.dtype)
    step_last = make_step(jnp.float32)

    out = x.astype(adj.dtype)
    for layer in range(num_layers):
        out = (step_last if layer == num_layers - 1 else step_mid)(adj, out)
    return out[:n] if n_pad != n else out


def propagate(adj: jax.Array, x: jax.Array, num_layers: int, *,
              path: str | None = None, tile_m: int | None = None,
              tile_k: int | None = None) -> jax.Array:
    """num_layers x (adj @ x) with f32 accumulation.  adj is expected in bf16."""
    n, d = x.shape
    adj_bytes = adj.size * adj.dtype.itemsize
    # resident path buffers: adj (bf16) + x (f32 in) + out (f32), 2x pipelined
    resident_need = 2 * (adj_bytes + n * d * 4 + n * d * 4)

    if path is None:
        if resident_need <= _RESIDENT_LIMIT:
            path = "resident"
        else:
            rows_tm = _pick_rows_tile_m(n, d, adj.dtype.itemsize)
            path = "rows" if rows_tm is not None else "reduce"
            if path == "rows" and tile_m is None:
                tile_m = rows_tm

    if path == "resident":
        return _propagate_resident(adj, x, num_layers)
    if path == "rows":
        tm = tile_m if tile_m is not None else (_pick_rows_tile_m(n, d, adj.dtype.itemsize) or 256)
        return _propagate_rows(adj, x, num_layers, tm)
    if path == "reduce":
        return _propagate_reduce(adj, x, num_layers,
                                 tile_m if tile_m is not None else 256,
                                 tile_k if tile_k is not None else 2048)
    raise ValueError(f"unknown propagate path: {path}")


# ----------------------------------------------------------------------------
# Fused modality projectors: one launch, (N, 2*embedding_dim) output slab
# ----------------------------------------------------------------------------
def _fused_projector_kernel(vf_ref, tf_ref, vwt_ref, twt_ref, vb_ref, tb_ref, o_ref):
    ed = vwt_ref.shape[1]
    v = jnp.dot(vf_ref[...], vwt_ref[...],
                preferred_element_type=jnp.float32) + vb_ref[...]
    t = jnp.dot(tf_ref[...], twt_ref[...],
                preferred_element_type=jnp.float32) + tb_ref[...]
    o_ref[:, :ed] = v        # direct slice writes (no concatenate materialization)
    o_ref[:, ed:] = t


def fused_projectors(v_feats, t_feats, v_w, v_b, t_w, t_b, *, row_tile: int = 512):
    n, v_dim = v_feats.shape
    t_dim = t_feats.shape[1]
    ed = v_w.shape[0]

    tn = min(row_tile, n)
    n_pad = _round_up(n, tn)
    vf = jnp.pad(v_feats, ((0, n_pad - n), (0, 0))) if n_pad != n else v_feats
    tf = jnp.pad(t_feats, ((0, n_pad - n), (0, 0))) if n_pad != n else t_feats

    # bf16 MXU operands (f32 accumulate); biases stay f32.
    vf = vf.astype(jnp.bfloat16)
    tf = tf.astype(jnp.bfloat16)
    vwt = v_w.T.astype(jnp.bfloat16)
    twt = t_w.T.astype(jnp.bfloat16)

    out = pl.pallas_call(
        _fused_projector_kernel,
        out_shape=jax.ShapeDtypeStruct((n_pad, 2 * ed), jnp.float32),
        grid_spec=pltpu.PrefetchScalarGridSpec(
            num_scalar_prefetch=0,
            grid=(n_pad // tn,),
            in_specs=[
                pl.BlockSpec((tn, v_dim), lambda i: (i, 0)),
                pl.BlockSpec((tn, t_dim), lambda i: (i, 0)),
                pl.BlockSpec((v_dim, ed), lambda i: (0, 0)),
                pl.BlockSpec((t_dim, ed), lambda i: (0, 0)),
                pl.BlockSpec((1, ed), lambda i: (0, 0)),
                pl.BlockSpec((1, ed), lambda i: (0, 0)),
            ],
            out_specs=pl.BlockSpec((tn, 2 * ed), lambda i: (i, 0)),
        ),
        compiler_params=pltpu.CompilerParams(
            dimension_semantics=("parallel",),
            vmem_limit_bytes=32 * _MiB,
        ),
        cost_estimate=pl.CostEstimate(
            flops=2 * n_pad * ed * (v_dim + t_dim),
            transcendentals=0,
            bytes_accessed=n_pad * (v_dim + t_dim) * 2 + n_pad * 2 * ed * 4,
        ),
    )(vf, tf, vwt, twt, v_b.reshape(1, ed), t_b.reshape(1, ed))

    out = out[:n]
    return out[:, :ed], out[:, ed:]


# ----------------------------------------------------------------------------
# __init__-time glue: kNN graph construction (plain JAX, mirrors get_knn_graph)
# ----------------------------------------------------------------------------
def get_knn_graph(features: jax.Array, knn_k: int, num_items: int) -> jax.Array:
    """Dense, non-symmetric, degree-normalized kNN adjacency (like the torch code)."""
    feats = features / (jnp.linalg.norm(features, axis=-1, keepdims=True) + 1e-12)
    sim = feats @ feats.T
    _, cols = lax.top_k(sim, knn_k)
    rows = jnp.broadcast_to(jnp.arange(num_items)[:, None], (num_items, knn_k))
    rows = rows.reshape(-1)
    cols = cols.reshape(-1)
    deg = 1e-7 + jnp.zeros((num_items,), jnp.float32).at[rows].add(1.0)
    deg_inv_sqrt = deg ** -0.5
    edge_weight = deg_inv_sqrt[rows] * deg_inv_sqrt[cols]
    adj = jnp.zeros((num_items, num_items), jnp.float32).at[rows, cols].set(edge_weight)
    return adj


# ----------------------------------------------------------------------------
# IISide forward
# ----------------------------------------------------------------------------
def iiside_forward(item_embds, m_adj, v_feats, t_feats, v_w, v_b, t_w, t_b,
                   num_layers: int, *, propagate_path: str | None = None):
    out_items = propagate(m_adj, item_embds, num_layers, path=propagate_path)
    v_out, t_out = fused_projectors(v_feats, t_feats, v_w, v_b, t_w, t_b)
    return out_items, v_out, t_out


if __name__ == "__main__":
    num_items = 256
    embedding_dim = 32
    v_dim = 64
    t_dim = 48
    num_layers = 2
    knn_k = 4
    weight4mAdj = 0.6

    key = jax.random.PRNGKey(0)
    k1, k2, k3, k4, k5, k6, k7 = jax.random.split(key, 7)

    # "pretrained" modality features (would come from pickle files)
    v_feats = jax.random.normal(k1, (num_items, v_dim), jnp.float32)
    t_feats = jax.random.normal(k2, (num_items, t_dim), jnp.float32)

    # mAdj = vAdj * w + tAdj * (1 - w); bf16 (MXU-native, halves HBM/VMEM bytes)
    v_adj = get_knn_graph(v_feats, knn_k, num_items)
    t_adj = get_knn_graph(t_feats, knn_k, num_items)
    m_adj = (v_adj * weight4mAdj + t_adj * (1.0 - weight4mAdj)).astype(jnp.bfloat16)

    # projector params (nn.Linear: weight (out, in), bias (out,))
    v_w = jax.random.normal(k3, (embedding_dim, v_dim), jnp.float32) * 0.02
    v_b = jax.random.normal(k4, (embedding_dim,), jnp.float32) * 0.02
    t_w = jax.random.normal(k5, (embedding_dim, t_dim), jnp.float32) * 0.02
    t_b = jax.random.normal(k6, (embedding_dim,), jnp.float32) * 0.02

    # forward input
    item_embds = jax.random.normal(k7, (num_items, embedding_dim), jnp.float32)

    # default path (resident fast path at this size)
    out_items, v_out, t_out = iiside_forward(
        item_embds, m_adj, v_feats, t_feats, v_w, v_b, t_w, t_b, num_layers
    )
    # also exercise the collapsed-K "rows" path (grid = (2,) at tile_m=128) ...
    out_items_rows = propagate(m_adj, item_embds, num_layers, path="rows", tile_m=128)
    # ... and the rectangular-tile reduction path (grid = (2, 2))
    out_items_reduce = propagate(m_adj, item_embds, num_layers,
                                 path="reduce", tile_m=128, tile_k=128)
    jax.block_until_ready((out_items, v_out, t_out, out_items_rows, out_items_reduce))

    # reference check (pure JAX, mirroring the per-layer bf16 rounding)
    adj_f32 = m_adj.astype(jnp.float32)
    ref = item_embds
    for _ in range(num_layers):
        ref = adj_f32 @ ref.astype(jnp.bfloat16).astype(jnp.float32)

    assert jnp.allclose(out_items, ref, atol=1e-2, rtol=1e-2)
    assert jnp.allclose(out_items_rows, ref, atol=1e-2, rtol=1e-2)
    assert jnp.allclose(out_items_reduce, ref, atol=1e-2, rtol=1e-2)

    ref_v = (v_feats.astype(jnp.bfloat16).astype(jnp.float32)
             @ v_w.T.astype(jnp.bfloat16).astype(jnp.float32) + v_b)
    ref_t = (t_feats.astype(jnp.bfloat16).astype(jnp.float32)
             @ t_w.T.astype(jnp.bfloat16).astype(jnp.float32) + t_b)
    assert jnp.allclose(v_out, ref_v, atol=1e-2, rtol=1e-2)
    assert jnp.allclose(t_out, ref_t, atol=1e-2, rtol=1e-2)

    print("KERNEL_OK")
</pallas_src>

<mosaic_0001>
module attributes {stable_mosaic.version = 11 : i64} {
  func.func @_propagate_resident_kernel(%arg0: i32, %arg1: memref<256x256xbf16, #tpu.memory_space<vmem>>, %arg2: memref<256x32xf32, #tpu.memory_space<vmem>>, %arg3: memref<256x32xf32, #tpu.memory_space<vmem>>) attributes {dimension_semantics = [#tpu.dimension_semantics<arbitrary>], iteration_bounds = array<i64: 1>, scalar_prefetch = 0 : i64, scratch_operands = 0 : i64, tpu.core_type = #tpu.core_type<tc>, window_params = [{pipeline_mode = #tpu.pipeline_mode<synchronous>, transform_indices = @transform_0, window_bounds = array<i64: 256, 256>}, {pipeline_mode = #tpu.pipeline_mode<synchronous>, transform_indices = @transform_1, window_bounds = array<i64: 256, 32>}, {pipeline_mode = #tpu.pipeline_mode<synchronous>, transform_indices = @transform_2, window_bounds = array<i64: 256, 32>}]} {
    %c0 = arith.constant 0 : index
    %c0_0 = arith.constant 0 : index
    %0 = vector.load %arg1[%c0, %c0_0] : memref<256x256xbf16, #tpu.memory_space<vmem>>, vector<256x256xbf16>
    %c0_1 = arith.constant 0 : index
    %c0_2 = arith.constant 0 : index
    %1 = vector.load %arg2[%c0_1, %c0_2] : memref<256x32xf32, #tpu.memory_space<vmem>>, vector<256x32xf32>
    %c0_i32 = arith.constant 0 : i32
    %c2_i32 = arith.constant 2 : i32
    %2 = arith.addi %c0_i32, %c2_i32 : i32
    %c1_i32 = arith.constant 1 : i32
    %3 = scf.for %arg4 = %c0_i32 to %2 step %c1_i32 iter_args(%arg5 = %1) -> (vector<256x32xf32>)  : i32 {
      %5 = arith.truncf %arg5 : vector<256x32xf32> to vector<256x32xbf16>
      %cst = arith.constant dense<0.000000e+00> : vector<256x32xf32>
      %6 = tpu.matmul %0, %5, %cst {dimension_numbers = #tpu.dot_dimension_numbers<[1], [0], [0], [1], [0, 0, 1, 1], [], []>} : vector<256x256xbf16>, vector<256x32xbf16>, vector<256x32xf32> -> vector<256x32xf32>
      scf.yield %6 : vector<256x32xf32>
    }
    %c0_3 = arith.constant 0 : index
    %c0_4 = arith.constant 0 : index
    %4 = vector.load %arg3[%c0_3, %c0_4] : memref<256x32xf32, #tpu.memory_space<vmem>>, vector<256x32xf32>
    tpu.vector_store %arg3[%c0_3, %c0_4], %3 {strides = array<i32>} : memref<256x32xf32, #tpu.memory_space<vmem>>, vector<256x32xf32>,
    return
  }
  func.func @transform_0(%arg0: i32) -> (i32, i32) {
    %c0_i32 = arith.constant 0 : i32
    %c0_i32_0 = arith.constant 0 : i32
    %c0_i32_1 = arith.constant 0 : i32
    return %c0_i32, %c0_i32_0 : i32, i32
  }
  func.func @transform_1(%arg0: i32) -> (i32, i32) {
    %c0_i32 = arith.constant 0 : i32
    %c0_i32_0 = arith.constant 0 : i32
    %c0_i32_1 = arith.constant 0 : i32
    return %c0_i32, %c0_i32_0 : i32, i32
  }
  func.func @transform_2(%arg0: i32) -> (i32, i32) {
    %c0_i32 = arith.constant 0 : i32
    %c0_i32_0 = arith.constant 0 : i32
    %c0_i32_1 = arith.constant 0 : i32
    return %c0_i32, %c0_i32_0 : i32, i32
  }
}

</mosaic_0001>

<bundles_post_ra>
// kernel: tpu_custom_call.1
= control target key start
LH: loop header
LB: loop body
LE: loop exit
PB: predicated region body
PF: predicated region fallthrough
CT: control target
= control target key end

     0   :  { %s2230_s0 = inlined_call_operand.vmem [shape: bf16[256,256], index: 0, kind: input, shape index: {}]   ;;  %s2231_s2 = inlined_call_operand.vmem [shape: f32[256,32], index: 2, kind: output, shape index: {}]   ;;  %s2232_s1 = inlined_call_operand.vmem [shape: f32[256,32], index: 1, kind: input, shape index: {}]  }
   0x1   :  { %v1327_v0 = vld [vmem:[%s2230_s0 + $0x4] sm:$0xf]  ;;  %v1332_v1 = vld [vmem:[%s2230_s0] sm:$0xf]  ;;  %v1337_v2 = vld [vmem:[%s2230_s0 + $0x8] sm:$0xf0] }
   0x2   :  { %2233 = vst [vmem:[#allocation2_spill] sm:$0xff] %v1327_v0  ;;  %v1342_v3 = vld [vmem:[%s2230_s0 + $0x4] sm:$0xf0]  ;;  %v1347_v4 = vld [vmem:[%s2230_s0 + $0x14] sm:$0xf] }
   0x3   :  { %2234 = vst [vmem:[#allocation3_spill] sm:$0xff] %v1332_v1  ;;  %v1352_v5 = vld [vmem:[%s2230_s0 + $0x10] sm:$0xf]  ;;  %v1357_v6 = vld [vmem:[%s2230_s0 + $0x18] sm:$0xf0] }
   0x4   :  { %2235 = vst [vmem:[#allocation4_spill] sm:$0xff] %v1337_v2  ;;  %v1362_v7 = vld [vmem:[%s2230_s0 + $0x14] sm:$0xf0]  ;;  %v1367_v8 = vld [vmem:[%s2230_s0 + $0x24] sm:$0xf] }
   0x5   :  { %2236 = vst [vmem:[#allocation5_spill] sm:$0xff] %v1342_v3  ;;  %v1372_v9 = vld [vmem:[%s2230_s0 + $0x20] sm:$0xf]  ;;  %v1377_v10 = vld [vmem:[%s2230_s0 + $0x28] sm:$0xf0] }
   0x6   :  { %2237 = vst [vmem:[#allocation6_spill] sm:$0xff] %v1347_v4  ;;  %v1382_v11 = vld [vmem:[%s2230_s0 + $0x24] sm:$0xf0]  ;;  %v1387_v12 = vld [vmem:[%s2230_s0 + $0x34] sm:$0xf] }
   0x7   :  { %2238 = vst [vmem:[#allocation7_spill] sm:$0xff] %v1352_v5  ;;  %v1392_v13 = vld [vmem:[%s2230_s0 + $0x30] sm:$0xf]  ;;  %v1397_v14 = vld [vmem:[%s2230_s0 + $0x38] sm:$0xf0] }
   0x8   :  { %2239 = vst [vmem:[#allocation8_spill] sm:$0xff] %v1357_v6  ;;  %v1402_v15 = vld [vmem:[%s2230_s0 + $0x34] sm:$0xf0]  ;;  %v1407_v16 = vld [vmem:[%s2230_s0 + $0x44] sm:$0xf] }
   0x9   :  { %2240 = vst [vmem:[#allocation9_spill] sm:$0xff] %v1362_v7  ;;  %v1412_v17 = vld [vmem:[%s2230_s0 + $0x40] sm:$0xf]  ;;  %v1417_v18 = vld [vmem:[%s2230_s0 + $0x48] sm:$0xf0] }
   0xa   :  { %2241 = vst [vmem:[#allocation10_spill] sm:$0xff] %v1367_v8  ;;  %v1422_v19 = vld [vmem:[%s2230_s0 + $0x44] sm:$0xf0]  ;;  %v1427_v20 = vld [vmem:[%s2230_s0 + $0x54] sm:$0xf] }
   0xb   :  { %2242 = vst [vmem:[#allocation11_spill] sm:$0xff] %v1372_v9  ;;  %v1432_v21 = vld [vmem:[%s2230_s0 + $0x50] sm:$0xf]  ;;  %v1437_v22 = vld [vmem:[%s2230_s0 + $0x58] sm:$0xf0] }
   0xc   :  { %2243 = vst [vmem:[#allocation12_spill] sm:$0xff] %v1377_v10  ;;  %v1442_v23 = vld [vmem:[%s2230_s0 + $0x54] sm:$0xf0]  ;;  %v1447_v24 = vld [vmem:[%s2230_s0 + $0x64] sm:$0xf] }
   0xd   :  { %2244 = vst [vmem:[#allocation13_spill] sm:$0xff] %v1382_v11  ;;  %v1452_v25 = vld [vmem:[%s2230_s0 + $0x60] sm:$0xf]  ;;  %v1457_v26 = vld [vmem:[%s2230_s0 + $0x68] sm:$0xf0] }
   0xe   :  { %2245 = vst [vmem:[#allocation14_spill] sm:$0xff] %v1387_v12  ;;  %v1462_v27 = vld [vmem:[%s2230_s0 + $0x64] sm:$0xf0]  ;;  %v1467_v28 = vld [vmem:[%s2230_s0 + $0x74] sm:$0xf] }
   0xf   :  { %2246 = vst [vmem:[#allocation15_spill] sm:$0xff] %v1392_v13  ;;  %v1472_v29 = vld [vmem:[%s2230_s0 + $0x70] sm:$0xf]  ;;  %v1477_v30 = vld [vmem:[%s2230_s0 + $0x78] sm:$0xf0] }
  0x10   :  { %2247 = vst [vmem:[#allocation16_spill] sm:$0xff] %v1397_v14  ;;  %v1482_v31 = vld [vmem:[%s2230_s0 + $0x74] sm:$0xf0]  ;;  %v1487_v32 = vld [vmem:[%s2230_s0 + $0x84] sm:$0xf] }
  0x11   :  { %2248 = vst [vmem:[#allocation17_spill] sm:$0xff] %v1402_v15  ;;  %v1492_v33 = vld [vmem:[%s2230_s0 + $0x80] sm:$0xf]  ;;  %v1497_v34 = vld [vmem:[%s2230_s0 + $0x88] sm:$0xf0] }
  0x12   :  { %2249 = vst [vmem:[#allocation18_spill] sm:$0xff] %v1407_v16  ;;  %v1502_v35 = vld [vmem:[%s2230_s0 + $0x84] sm:$0xf0]  ;;  %v1507_v36 = vld [vmem:[%s2230_s0 + $0x94] sm:$0xf] }
  0x13   :  { %2250 = vst [vmem:[#allocation19_spill] sm:$0xff] %v1412_v17  ;;  %v1512_v37 = vld [vmem:[%s2230_s0 + $0x90] sm:$0xf]  ;;  %v1517_v38 = vld [vmem:[%s2230_s0 + $0x98] sm:$0xf0] }
  0x14   :  { %2251 = vst [vmem:[#allocation20_spill] sm:$0xff] %v1417_v18  ;;  %v1522_v39 = vld [vmem:[%s2230_s0 + $0x94] sm:$0xf0]  ;;  %v1527_v40 = vld [vmem:[%s2230_s0 + $0xa4] sm:$0xf]  ;;  %v69_v16 = vld [vmem:[%s2232_s1 + $0xd0] sm:$0xff]  }
  0x15   :  { %2252 = vst [vmem:[#allocation21_spill] sm:$0xff] %v1422_v19  ;;  %v1532_v41 = vld [vmem:[%s2230_s0 + $0xa0] sm:$0xf]  ;;  %v1537_v42 = vld [vmem:[%s2230_s0 + $0xa8] sm:$0xf0]  ;;  %v70_v18 = vld [vmem:[%s2232_s1 + $0xd8] sm:$0xff]  }
  0x16   :  { %2253 = vst [vmem:[#allocation22_spill] sm:$0xff] %v1427_v20  ;;  %v1542_v43 = vld [vmem:[%s2230_s0 + $0xa4] sm:$0xf0]  ;;  %v1547_v44 = vld [vmem:[%s2230_s0 + $0xb4] sm:$0xf]  ;;  %v74_v17 = vld [vmem:[%s2232_s1 + $0xf8] sm:$0xff]  }
  0x17   :  { %2254 = vst [vmem:[#allocation23_spill] sm:$0xff] %v1432_v21  ;;  %v1552_v45 = vld [vmem:[%s2230_s0 + $0xb0] sm:$0xf]  ;;  %v1557_v46 = vld [vmem:[%s2230_s0 + $0xb8] sm:$0xf0] }
  0x18   :  { %2255 = vst [vmem:[#allocation24_spill] sm:$0xff] %v1437_v22  ;;  %v1562_v47 = vld [vmem:[%s2230_s0 + $0xb4] sm:$0xf0]  ;;  %v1567_v48 = vld [vmem:[%s2230_s0 + $0xc4] sm:$0xf]  ;;  %v61_v20 = vld [vmem:[%s2232_s1 + $0x90] sm:$0xff]  }
  0x19   :  { %2256 = vst [vmem:[#allocation25_spill] sm:$0xff] %v1442_v23  ;;  %v1572_v49 = vld [vmem:[%s2230_s0 + $0xc0] sm:$0xf]  ;;  %v1577_v50 = vld [vmem:[%s2230_s0 + $0xc8] sm:$0xf0]  ;;  %v62_v22 = vld [vmem:[%s2232_s1 + $0x98] sm:$0xff]  }
  0x1a   :  { %2257 = vst [vmem:[#allocation26_spill] sm:$0xff] %v1447_v24  ;;  %v1582_v51 = vld [vmem:[%s2230_s0 + $0xc4] sm:$0xf0]  ;;  %v1587_v52 = vld [vmem:[%s2230_s0 + $0xd4] sm:$0xf]  ;;  %v66_v21 = vld [vmem:[%s2232_s1 + $0xb8] sm:$0xff]  }
  0x1b   :  { %2258 = vst [vmem:[#allocation27_spill] sm:$0xff] %v1452_v25  ;;  %v1592_v53 = vld [vmem:[%s2230_s0 + $0xd0] sm:$0xf]  ;;  %v1597_v54 = vld [vmem:[%s2230_s0 + $0xd8] sm:$0xf0] }
  0x1c   :  { %2259 = vst [vmem:[#allocation28_spill] sm:$0xff] %v1457_v26  ;;  %v1602_v55 = vld [vmem:[%s2230_s0 + $0xd4] sm:$0xf0]  ;;  %v1607_v56 = vld [vmem:[%s2230_s0 + $0xe4] sm:$0xf]  ;;  %v53_v24 = vld [vmem:[%s2232_s1 + $0x50] sm:$0xff]  }
  0x1d   :  { %2260 = vst [vmem:[#allocation29_spill] sm:$0xff] %v1462_v27  ;;  %v1612_v57 = vld [vmem:[%s2230_s0 + $0xe0] sm:$0xf]  ;;  %v1617_v58 = vld [vmem:[%s2230_s0 + $0xe8] sm:$0xf0]  ;;  %v54_v26 = vld [vmem:[%s2232_s1 + $0x58] sm:$0xff]  }
  0x1e   :  { %2261 = vst [vmem:[#allocation30_spill] sm:$0xff] %v1467_v28  ;;  %v1622_v59 = vld [vmem:[%s2230_s0 + $0xe4] sm:$0xf0]  ;;  %v1627_v60 = vld [vmem:[%s2230_s0 + $0xf4] sm:$0xf]  ;;  %v43_v28 = vld [vmem:[%s2232_s1] sm:$0xff]  }
  0x1f   :  { %2262 = vst [vmem:[#allocation31_spill] sm:$0xff] %v1472_v29  ;;  %v1632_v61 = vld [vmem:[%s2230_s0 + $0xf0] sm:$0xf]  ;;  %v1637_v62 = vld [vmem:[%s2230_s0 + $0xf8] sm:$0xf0] }
  0x20   :  { %2263 = vst [vmem:[#allocation32_spill] sm:$0xff] %v1477_v30  ;;  %v1642_v63 = vld [vmem:[%s2230_s0 + $0xf4] sm:$0xf0]  ;;  %v45_v30 = vld [vmem:[%s2232_s1 + $0x10] sm:$0xff]  }
  0x21   :  { %2264 = vst [vmem:[#allocation33_spill] sm:$0xff] %v1482_v31  ;;  %v49_v31 = vld [vmem:[%s2232_s1 + $0x30] sm:$0xff]   ;;  %v50_v29 = vld [vmem:[%s2232_s1 + $0x38] sm:$0xff]  }
  0x22   :  { %2265 = vst [vmem:[#allocation34_spill] sm:$0xff] %v1487_v32  ;;  %v57_v27 = vld [vmem:[%s2232_s1 + $0x70] sm:$0xff]   ;;  %v58_v25 = vld [vmem:[%s2232_s1 + $0x78] sm:$0xff]  }
  0x23   :  { %2266 = vst [vmem:[#allocation35_spill] sm:$0xff] %v1492_v33  ;;  %v65_v23 = vld [vmem:[%s2232_s1 + $0xb0] sm:$0xff]  }
  0x24   :  { %2267 = vst [vmem:[#allocation36_spill] sm:$0xff] %v1497_v34  ;;  %v73_v19 = vld [vmem:[%s2232_s1 + $0xf0] sm:$0xff]  }
  0x25   :  { %2268 = vst [vmem:[#allocation37_spill] sm:$0xff] %v1502_v35 }
  0x26   :  { %2269 = vst [vmem:[#allocation38_spill] sm:$0xff] %v1507_v36 }
  0x27   :  { %2270 = vst [vmem:[#allocation39_spill] sm:$0xff] %v1512_v37 }
  0x28   :  { %2271 = vst [vmem:[#allocation40_spill] sm:$0xff] %v1517_v38 }
  0x29   :  { %2272 = vst [vmem:[#allocation41_spill] sm:$0xff] %v1522_v39 }
  0x2a   :  { %2273 = vst [vmem:[#allocation42_spill] sm:$0xff] %v1527_v40 }
  0x2b   :  { %2274 = vst [vmem:[#allocation43_spill] sm:$0xff] %v1532_v41 }
  0x2c   :  { %2275 = vst [vmem:[#allocation44_spill] sm:$0xff] %v1537_v42 }
  0x2d   :  { %2276 = vst [vmem:[#allocation45_spill] sm:$0xff] %v1542_v43 }
  0x2e   :  { %2277 = vst [vmem:[#allocation46_spill] sm:$0xff] %v1547_v44 }
  0x2f   :  { %2278 = vst [vmem:[#allocation47_spill] sm:$0xff] %v1552_v45 }
  0x30   :  { %2279 = vst [vmem:[#allocation48_spill] sm:$0xff] %v1557_v46 }
  0x31   :  { %2280 = vst [vmem:[#allocation49_spill] sm:$0xff] %v1562_v47 }
  0x32   :  { %2281 = vst [vmem:[#allocation50_spill] sm:$0xff] %v1567_v48  ;;  %v67_v48 = vld [vmem:[%s2232_s1 + $0xc0] sm:$0xff]  }
  0x33   :  { %2282 = vst [vmem:[#allocation51_spill] sm:$0xff] %v1572_v49  ;;  %v72_v49 = vld [vmem:[%s2232_s1 + $0xe8] sm:$0xff]  }
  0x34   :  { %2283 = vst [vmem:[#allocation52_spill] sm:$0xff] %v1577_v50  ;;  %v68_v50 = vld [vmem:[%s2232_s1 + $0xc8] sm:$0xff]  }
  0x35   :  { %2284 = vst [vmem:[#allocation53_spill] sm:$0xff] %v1582_v51  ;;  %v71_v51 = vld [vmem:[%s2232_s1 + $0xe0] sm:$0xff]  }
  0x36   :  { %2285 = vst [vmem:[#allocation54_spill] sm:$0xff] %v1587_v52  ;;  %v59_v52 = vld [vmem:[%s2232_s1 + $0x80] sm:$0xff]  }
  0x37   :  { %2286 = vst [vmem:[#allocation55_spill] sm:$0xff] %v1592_v53  ;;  %v64_v53 = vld [vmem:[%s2232_s1 + $0xa8] sm:$0xff]  }
  0x38   :  { %2287 = vst [vmem:[#allocation56_spill] sm:$0xff] %v1597_v54  ;;  %v60_v54 = vld [vmem:[%s2232_s1 + $0x88] sm:$0xff]  }
  0x39   :  { %2288 = vst [vmem:[#allocation57_spill] sm:$0xff] %v1602_v55  ;;  %v63_v55 = vld [vmem:[%s2232_s1 + $0xa0] sm:$0xff]  }
  0x3a   :  { %2289 = vst [vmem:[#allocation58_spill] sm:$0xff] %v1607_v56  ;;  %v51_v56 = vld [vmem:[%s2232_s1 + $0x40] sm:$0xff]  }
  0x3b   :  { %2290 = vst [vmem:[#allocation59_spill] sm:$0xff] %v1612_v57  ;;  %v56_v57 = vld [vmem:[%s2232_s1 + $0x68] sm:$0xff]  }
  0x3c   :  { %2291 = vst [vmem:[#allocation60_spill] sm:$0xff] %v1617_v58  ;;  %v52_v58 = vld [vmem:[%s2232_s1 + $0x48] sm:$0xff]  }
  0x3d   :  { %2292 = vst [vmem:[#allocation61_spill] sm:$0xff] %v1622_v59  ;;  %v55_v59 = vld [vmem:[%s2232_s1 + $0x60] sm:$0xff]  }
  0x3e   :  { %2293 = vst [vmem:[#allocation62_spill] sm:$0xff] %v1627_v60  ;;  %v44_v60 = vld [vmem:[%s2232_s1 + $0x8] sm:$0xff]  }
  0x3f   :  { %2294 = vst [vmem:[#allocation63_spill] sm:$0xff] %v1632_v61  ;;  %v48_v61 = vld [vmem:[%s2232_s1 + $0x28] sm:$0xff]  }
  0x40   :  { %2295 = vst [vmem:[#allocation64_spill] sm:$0xff] %v1637_v62  ;;  %v46_v62 = vld [vmem:[%s2232_s1 + $0x18] sm:$0xff]  }
  0x41   :  { %2296 = vst [vmem:[#allocation65_spill] sm:$0xff] %v1642_v63  ;;  %v47_v63 = vld [vmem:[%s2232_s1 + $0x20] sm:$0xff]   ;;  %s1804_s1 = smov 0  }
  0x42 LB: > { %v120_v44 = vpack.c.bf16 %v1243_v25, %v1247_v27  ;;  %v128_v46 = vpack.c.bf16 %v1179_v17, %v1183_v19  ;;  %v119_v12 = vpack.c.bf16 %v1251_v57, %v1255_v59  ;;  %v127_v14 = vpack.c.bf16 %v1187_v49, %v1191_v51  ;;  %v2297_v1 = vld [vmem:[#allocation3_spill] sm:$0xff]  ;;  %v2298_v3 = vld [vmem:[#allocation5_spill] sm:$0xff]  ;;  %v2301_v2 = vld [vmem:[#allocation4_spill] sm:$0xff]  ;;  %s80_s3 = sadd.s32 1, %s1307_s1   ;;  %s1307_s1 = sphi %s1804_s1, %s2424_s1   ;;  %v1303_v28 = vphi %v43_v28, %v2423_v28   ;;  %v1299_v60 = vphi %v44_v60, %v2422_v60   ;;  %v1295_v30 = vphi %v45_v30, %v2421_v30   ;;  %v1291_v62 = vphi %v46_v62, %v2420_v62   ;;  %v1287_v63 = vphi %v47_v63, %v2419_v63   ;;  %v1283_v61 = vphi %v48_v61, %v2418_v61   ;;  %v1279_v31 = vphi %v49_v31, %v2417_v31   ;;  %v1275_v29 = vphi %v50_v29, %v2416_v29   ;;  %v1271_v56 = vphi %v51_v56, %v2415_v56   ;;  %v1267_v58 = vphi %v52_v58, %v2414_v58   ;;  %v1263_v24 = vphi %v53_v24, %v2413_v24   ;;  %v1259_v26 = vphi %v54_v26, %v2412_v26   ;;  %v1255_v59 = vphi %v55_v59, %v2411_v59   ;;  %v1251_v57 = vphi %v56_v57, %v2410_v57   ;;  %v1247_v27 = vphi %v57_v27, %v2409_v27   ;;  %v1243_v25 = vphi %v58_v25, %v2408_v25   ;;  %v1239_v52 = vphi %v59_v52, %v2407_v52   ;;  %v1235_v54 = vphi %v60_v54, %v2406_v54   ;;  %v1231_v20 = vphi %v61_v20, %v2405_v20   ;;  %v1227_v22 = vphi %v62_v22, %v2404_v22   ;;  %v1223_v55 = vphi %v63_v55, %v2403_v55   ;;  %v1219_v53 = vphi %v64_v53, %v2402_v53   ;;  %v1215_v23 = vphi %v65_v23, %v2401_v23   ;;  %v1211_v21 = vphi %v66_v21, %v2400_v21   ;;  %v1207_v48 = vphi %v67_v48, %v2399_v48   ;;  %v1203_v50 = vphi %v68_v50, %v2398_v50   ;;  %v1199_v16 = vphi %v69_v16, %v2397_v16   ;;  %v1195_v18 = vphi %v70_v18, %v2396_v18   ;;  %v1191_v51 = vphi %v71_v51, %v2395_v51   ;;  %v1187_v49 = vphi %v72_v49, %v2394_v49   ;;  %v1183_v19 = vphi %v73_v19, %v2393_v19   ;;  %v1179_v17 = vphi %v74_v17, %v2392_v17  }
  0x43   : > { %v118_v47 = vpack.c.bf16 %v1259_v26, %v1263_v24  ;;  %v126_v45 = vpack.c.bf16 %v1195_v18, %v1199_v16  ;;  %v117_v15 = vpack.c.bf16 %v1267_v58, %v1271_v56  ;;  %v125_v13 = vpack.c.bf16 %v1203_v50, %v1207_v48  ;;  %v2299_v33 = vld [vmem:[#allocation35_spill] sm:$0xff]  ;;  %v2300_v35 = vld [vmem:[#allocation37_spill] sm:$0xff]  ;;  %v2302_v0 = vld [vmem:[#allocation2_spill] sm:$0xff]  ;;  %p1968_p0 = scmp.ge.s32.totalorder %s80_s3, 2   ;;  %s2424_s1 = smov %s80_s3 }
  0x44   : > { %289 = vmatpush.bf16.msra.mxu0 %v120_v44  ;;  %765 = vmatpush.bf16.msra.mxu2 %v120_v44  ;;  %v116_v17 = vpack.c.bf16 %v1275_v29, %v1279_v31  ;;  %v124_v19 = vpack.c.bf16 %v1211_v21, %v1215_v23  ;;  %v115_v25 = vpack.c.bf16 %v1283_v61, %v1287_v63  ;;  %v2303_v34 = vld [vmem:[#allocation36_spill] sm:$0xff]  ;;  %v2304_v32 = vld [vmem:[#allocation34_spill] sm:$0xff]  ;;  %v2305_v5 = vld [vmem:[#allocation7_spill] sm:$0xff]  ;;  %vm467_vm0 = vcmask (%p1968_p0), 261120  }
  0x45   : > { %378 = vmatpush.bf16.msra.mxu1 %v128_v46  ;;  %773 = vmatpush.bf16.msra.mxu3 %v128_v46  ;;  %v122_v16 = vpack.c.bf16 %v1227_v22, %v1231_v20  ;;  %v113_v18 = vpack.c.bf16 %v1299_v60, %v1303_v28  ;;  %v672_v21 = vor.u32 %v2300_v35, %v2299_v33  ;;  %v2306_v7 = vld [vmem:[#allocation9_spill] sm:$0xff]  ;;  %v2307_v37 = vld [vmem:[#allocation39_spill] sm:$0xff]  ;;  %v2309_v6 = vld [vmem:[#allocation8_spill] sm:$0xff] }
  0x46   : > { %v612_v23 = vor.u32 %v2302_v0, %v2301_v2  ;;  %v676_v20 = vor.u32 %v2304_v32, %v2303_v34  ;;  %v616_v22 = vor.u32 %v2306_v7, %v2305_v5  ;;  %v2308_v39 = vld [vmem:[#allocation41_spill] sm:$0xff]  ;;  %v2310_v4 = vld [vmem:[#allocation6_spill] sm:$0xff]  ;;  %v2311_v38 = vld [vmem:[#allocation40_spill] sm:$0xff] }
  0x47   : > { %v680_v24 = vor.u32 %v2308_v39, %v2307_v37  ;;  %v620_v26 = vor.u32 %v2310_v4, %v2309_v6  ;;  %v2312_v36 = vld [vmem:[#allocation38_spill] sm:$0xff]  ;;  %v2313_v9 = vld [vmem:[#allocation11_spill] sm:$0xff]  ;;  %v2314_v11 = vld [vmem:[#allocation13_spill] sm:$0xff] }
  0x48   : > { %290 = vmatpush.bf16.msra.mxu0 %v119_v12  ;;  %766 = vmatpush.bf16.msra.mxu2 %v119_v12  ;;  %v123_v12 = vpack.c.bf16 %v1219_v53, %v1223_v55  ;;  %v684_v27 = vor.u32 %v2312_v36, %v2311_v38  ;;  %v624_v28 = vor.u32 %v2314_v11, %v2313_v9  ;;  %v2315_v41 = vld [vmem:[#allocation43_spill] sm:$0xff]  ;;  %v2316_v43 = vld [vmem:[#allocation45_spill] sm:$0xff]  ;;  %v2317_v10 = vld [vmem:[#allocation12_spill] sm:$0xff] }
  0x49   : > { %379 = vmatpush.bf16.msra.mxu1 %v127_v14  ;;  %774 = vmatpush.bf16.msra.mxu3 %v127_v14  ;;  %v114_v14 = vpack.c.bf16 %v1291_v62, %v1295_v30  ;;  %v688_v29 = vor.u32 %v2316_v43, %v2315_v41  ;;  %v2318_v8 = vld [vmem:[#allocation10_spill] sm:$0xff]  ;;  %v2319_v42 = vld [vmem:[#allocation44_spill] sm:$0xff]  ;;  %v2321_v44 = vld [vmem:[#allocation15_spill] sm:$0xff] }
  0x4a   : > { %v628_v30 = vor.u32 %v2318_v8, %v2317_v10  ;;  %v2320_v40 = vld [vmem:[#allocation42_spill] sm:$0xff]  ;;  %v2324_v48 = vld [vmem:[#allocation49_spill] sm:$0xff]  ;;  %v2325_v50 = vld [vmem:[#allocation16_spill] sm:$0xff] }
  0x4b   : > { %v692_v31 = vor.u32 %v2320_v40, %v2319_v42  ;;  %v2326_v51 = vld [vmem:[#allocation14_spill] sm:$0xff]  ;;  %v2327_v53 = vld [vmem:[#allocation48_spill] sm:$0xff]  ;;  %v2329_v56 = vld [vmem:[#allocation19_spill] sm:$0xff] }
  0x4c   : > { %291 = vmatpush.bf16.msra.mxu0 %v118_v47  ;;  %767 = vmatpush.bf16.msra.mxu2 %v118_v47  ;;  %v2323_v47 = vld [vmem:[#allocation47_spill] sm:$0xff]  ;;  %v2330_v57 = vld [vmem:[#allocation21_spill] sm:$0xff]  ;;  %v2333_v62 = vld [vmem:[#allocation20_spill] sm:$0xff] }
  0x4d   : > { %380 = vmatpush.bf16.msra.mxu1 %v126_v45  ;;  %775 = vmatpush.bf16.msra.mxu3 %v126_v45  ;;  %v2322_v45 = vld [vmem:[#allocation17_spill] sm:$0xff]  ;;  %v696_v49 = vor.u32 %v2324_v48, %v2323_v47  ;;  %v640_v58 = vor.u32 %v2330_v57, %v2329_v56  ;;  %v2331_v59 = vld [vmem:[#allocation51_spill] sm:$0xff]  ;;  %v2334_v63 = vld [vmem:[#allocation18_spill] sm:$0xff] }
  0x4e   : > { %v632_v46 = vor.u32 %v2322_v45, %v2321_v44  ;;  %v2332_v60 = vld [vmem:[#allocation53_spill] sm:$0xff]  ;;  %v2350_v47 = vld [vmem:[#allocation26_spill] sm:$0xff] }
  0x4f   : > { %v704_v61 = vor.u32 %v2332_v60, %v2331_v59  ;;  %v2348_v44 = vld [vmem:[#allocation61_spill] sm:$0xff]  ;;  %v2358_v59 = vld [vmem:[#allocation30_spill] sm:$0xff] }
  0x50   : > { %292 = vmatpush.bf16.msra.mxu0 %v117_v15  ;;  %768 = vmatpush.bf16.msra.mxu2 %v117_v15  ;;  %v121_v15 = vpack.c.bf16 %v1235_v54, %v1239_v52  ;;  %v636_v52 = vor.u32 %v2326_v51, %v2325_v50  ;;  %v2328_v54 = vld [vmem:[#allocation46_spill] sm:$0xff]  ;;  %v2356_v56 = vld [vmem:[#allocation65_spill] sm:$0xff] }
  0x51   : > { %381 = vmatpush.bf16.msra.mxu1 %v125_v13  ;;  %776 = vmatpush.bf16.msra.mxu3 %v125_v13  ;;  %v608_v13 = vor.u32 %v2298_v3, %v2297_v1  ;;  %v700_v55 = vor.u32 %v2328_v54, %v2327_v53  ;;  %v2352_v50 = vld [vmem:[#allocation58_spill] sm:$0xff]  ;;  %v2354_v53 = vld [vmem:[#allocation33_spill] sm:$0xff] }
  0x54   : > { %293 = vmatpush.bf16.msra.mxu0 %v116_v17  ;;  %769 = vmatpush.bf16.msra.mxu2 %v116_v17  ;;  %v644_v17 = vor.u32 %v2334_v63, %v2333_v62  ;;  %v2360_v62 = vld [vmem:[#allocation62_spill] sm:$0xff] }
  0x55   : > { %382 = vmatpush.bf16.msra.mxu1 %v124_v19  ;;  %777 = vmatpush.bf16.msra.mxu3 %v124_v19  ;;  %v2335_v19 = vld [vmem:[#allocation52_spill] sm:$0xff] }
  0x58   : > { %294 = vmatpush.bf16.msra.mxu0 %v115_v25  ;;  %770 = vmatpush.bf16.msra.mxu2 %v115_v25  ;;  %v2336_v25 = vld [vmem:[#allocation50_spill] sm:$0xff] }
  0x59   : > { %383 = vmatpush.bf16.msra.mxu1 %v123_v12  ;;  %778 = vmatpush.bf16.msra.mxu3 %v123_v12  ;;  %v708_v12 = vor.u32 %v2336_v25, %v2335_v19 }
  0x5c   : > { %295 = vmatpush.bf16.msra.mxu0 %v114_v14  ;;  %771 = vmatpush.bf16.msra.mxu2 %v114_v14  ;;  %v2337_v14 = vld [vmem:[#allocation23_spill] sm:$0xff] }
  0x5d   : > { %384 = vmatpush.bf16.msra.mxu1 %v122_v16  ;;  %779 = vmatpush.bf16.msra.mxu3 %v122_v16  ;;  %v2338_v16 = vld [vmem:[#allocation25_spill] sm:$0xff] }
  0x60   : > { %296 = vmatpush.bf16.msra.mxu0 %v113_v18  ;;  %772 = vmatpush.bf16.msra.mxu2 %v113_v18  ;;  %v648_v18 = vor.u32 %v2338_v16, %v2337_v14 }
  0x61   : > { %385 = vmatpush.bf16.msra.mxu1 %v121_v15  ;;  %780 = vmatpush.bf16.msra.mxu3 %v121_v15  ;;  %v2339_v15 = vld [vmem:[#allocation55_spill] sm:$0xff] }
  0x63   : > { %297 = vmatmul.bf16.vlgmr.msra.gmra.mxu0 %v608_v13  ;;  %337 = vmatmul.bf16.vlgmr.msra.gmra.mxu2 %v672_v21  ;;  %v2340_v13 = vld [vmem:[#allocation57_spill] sm:$0xff] }
  0x64   : > { %386 = vmatmul.bf16.vlgmr.msra.gmra.mxu1 %v612_v23  ;;  %426 = vmatmul.bf16.vlgmr.msra.gmra.mxu3 %v676_v20  ;;  %v712_v21 = vor.u32 %v2340_v13, %v2339_v15  ;;  %v2341_v23 = vld [vmem:[#allocation24_spill] sm:$0xff]  ;;  %v2342_v20 = vld [vmem:[#allocation22_spill] sm:$0xff] }
  0x73   : > { %302 = vmatmul.bf16.gmra.mxu0 %v616_v22  ;;  %342 = vmatmul.bf16.gmra.mxu2 %v680_v24  ;;  %v652_v22 = vor.u32 %v2342_v20, %v2341_v23  ;;  %v2343_v24 = vld [vmem:[#allocation56_spill] sm:$0xff] }
  0x74   : > { %391 = vmatmul.bf16.gmra.mxu1 %v620_v26  ;;  %431 = vmatmul.bf16.gmra.mxu3 %v684_v27  ;;  %v2344_v26 = vld [vmem:[#allocation54_spill] sm:$0xff] }
  0x75   : > { %v716_v27 = vor.u32 %v2344_v26, %v2343_v24 }
  0x83   : > { %307 = vmatmul.bf16.gmra.mxu0 %v624_v28  ;;  %347 = vmatmul.bf16.gmra.mxu2 %v688_v29  ;;  %v2345_v28 = vld [vmem:[#allocation27_spill] sm:$0xff]  ;;  %v2346_v29 = vld [vmem:[#allocation29_spill] sm:$0xff] }
  0x84   : > { %396 = vmatmul.bf16.gmra.mxu1 %v628_v30  ;;  %436 = vmatmul.bf16.gmra.mxu3 %v692_v31  ;;  %v656_v30 = vor.u32 %v2346_v29, %v2345_v28  ;;  %v2347_v31 = vld [vmem:[#allocation59_spill] sm:$0xff] }
  0x85   : > { %v720_v45 = vor.u32 %v2348_v44, %v2347_v31 }
  0x93   : > { %312 = vmatmul.bf16.gmra.mxu0 %v632_v46  ;;  %352 = vmatmul.bf16.gmra.mxu2 %v696_v49  ;;  %v2349_v46 = vld [vmem:[#allocation28_spill] sm:$0xff] }
  0x94   : > { %401 = vmatmul.bf16.gmra.mxu1 %v636_v52  ;;  %441 = vmatmul.bf16.gmra.mxu3 %v700_v55  ;;  %v660_v48 = vor.u32 %v2350_v47, %v2349_v46  ;;  %v2351_v49 = vld [vmem:[#allocation60_spill] sm:$0xff]  ;;  %v2353_v52 = vld [vmem:[#allocation31_spill] sm:$0xff] }
  0x95   : > { %v724_v51 = vor.u32 %v2352_v50, %v2351_v49  ;;  %v664_v54 = vor.u32 %v2354_v53, %v2353_v52  ;;  %v2355_v55 = vld [vmem:[#allocation63_spill] sm:$0xff] }
  0x96   : > { %v728_v57 = vor.u32 %v2356_v56, %v2355_v55 }
  0xa3   : > { %317 = vmatmul.bf16.gmra.mxu0 %v640_v58  ;;  %357 = vmatmul.bf16.gmra.mxu2 %v704_v61  ;;  %v2357_v58 = vld [vmem:[#allocation32_spill] sm:$0xff] }
  0xa4   : > { %406 = vmatmul.bf16.gmra.mxu1 %v644_v17  ;;  %446 = vmatmul.bf16.gmra.mxu3 %v708_v12  ;;  %v668_v60 = vor.u32 %v2358_v59, %v2357_v58  ;;  %v2359_v61 = vld [vmem:[#allocation64_spill] sm:$0xff] }
  0xa5   : > { %v732_v63 = vor.u32 %v2360_v62, %v2359_v61 }
  0xb3   : > { %322 = vmatmul.bf16.gmra.mxu0 %v648_v18  ;;  %362 = vmatmul.bf16.gmra.mxu2 %v712_v21 }
  0xb4   : > { %411 = vmatmul.bf16.gmra.mxu1 %v652_v22  ;;  %451 = vmatmul.bf16.gmra.mxu3 %v716_v27 }
  0xc3   : > { %327 = vmatmul.bf16.gmra.mxu0 %v656_v30  ;;  %367 = vmatmul.bf16.gmra.mxu2 %v720_v45 }
  0xc4   : > { %416 = vmatmul.bf16.gmra.mxu1 %v660_v48  ;;  %456 = vmatmul.bf16.gmra.mxu3 %v724_v51 }
  0xd3   : > { %332 = vmatmul.bf16.gmra.mxu0 %v664_v54  ;;  %372 = vmatmul.bf16.gmra.mxu2 %v728_v57 }
  0xd4   : > { %421 = vmatmul.bf16.gmra.mxu1 %v668_v60  ;;  %461 = vmatmul.bf16.gmra.mxu3 %v732_v63 }
  0xe0   : > { %v298_v17 = vpop.f32.mrf.mxu0 }
  0xe1   : > { %v387_v19 = vpop.f32.mrf.mxu1 }
  0xe2   : > { %v1905_v28 = vadd.f32 %v387_v19, %v298_v17  }
  0xe4   : > { %v2361_v12 = vmov %v1905_v28 }
  0xe5   :  { %468 = vst.msk [vmem:[%s2231_s2] sm:$0xff] (%p1968_p0), %vm467_vm0, %v2361_v12 }
  0xe6   : > { %v338_v25 = vpop.f32.mrf.mxu2 }
  0xe7   : > { %v427_v14 = vpop.f32.mrf.mxu3 }
  0xe8   : > { %v1907_v52 = vadd.f32 %v427_v14, %v338_v25   ;;  %v300_v16 = vpop.f32.mrf.mxu0 }
  0xe9   : > { %v389_v18 = vpop.f32.mrf.mxu1 }
  0xea   : > { %v2362_v15 = vmov %v1907_v52  ;;  %v1909_v60 = vadd.f32 %v389_v18, %v300_v16  }
  0xeb   :  { %484 = vst.msk [vmem:[%s2231_s2 + $0x80] sm:$0xff] (%p1968_p0), %vm467_vm0, %v2362_v15 }
  0xec   : > { %v2363_v13 = vmov %v1909_v60 }
  0xed   :  { %469 = vst.msk [vmem:[%s2231_s2 + $0x8] sm:$0xff] (%p1968_p0), %vm467_vm0, %v2363_v13 }
  0xee   : > { %v340_v21 = vpop.f32.mrf.mxu2 }
  0xef   : > { %v429_v23 = vpop.f32.mrf.mxu3 }
  0xf0   : > { %v1911_v54 = vadd.f32 %v429_v23, %v340_v21   ;;  %v303_v20 = vpop.f32.mrf.mxu0 }
  0xf1   : > { %v392_v22 = vpop.f32.mrf.mxu1 }
  0xf2   : > { %v2364_v44 = vmov %v1911_v54  ;;  %v1913_v30 = vadd.f32 %v392_v22, %v303_v20  }
  0xf3   :  { %485 = vst.msk [vmem:[%s2231_s2 + $0x88] sm:$0xff] (%p1968_p0), %vm467_vm0, %v2364_v44 }
  0xf4   : > { %v2365_v45 = vmov %v1913_v30 }
  0xf5   :  { %470 = vst.msk [vmem:[%s2231_s2 + $0x10] sm:$0xff] (%p1968_p0), %vm467_vm0, %v2365_v45 }
  0xf6   : > { %v343_v24 = vpop.f32.mrf.mxu2 }
  0xf7   : > { %v432_v26 = vpop.f32.mrf.mxu3 }
  0xf8   : > { %v1915_v20 = vadd.f32 %v432_v26, %v343_v24   ;;  %v305_v27 = vpop.f32.mrf.mxu0 }
  0xf9   : > { %v394_v28 = vpop.f32.mrf.mxu1 }
  0xfa   : > { %v2366_v46 = vmov %v1915_v20  ;;  %v1917_v62 = vadd.f32 %v394_v28, %v305_v27  }
  0xfb   :  { %486 = vst.msk [vmem:[%s2231_s2 + $0x90] sm:$0xff] (%p1968_p0), %vm467_vm0, %v2366_v46 }
  0xfc   : > { %v2367_v47 = vmov %v1917_v62 }
  0xfd   :  { %471 = vst.msk [vmem:[%s2231_s2 + $0x18] sm:$0xff] (%p1968_p0), %vm467_vm0, %v2367_v47 }
  0xfe   : > { %v345_v29 = vpop.f32.mrf.mxu2 }
  0xff   : > { %v434_v31 = vpop.f32.mrf.mxu3 }
 0x100   : > { %v1919_v22 = vadd.f32 %v434_v31, %v345_v29   ;;  %v308_v48 = vpop.f32.mrf.mxu0 }
 0x101   : > { %v397_v49 = vpop.f32.mrf.mxu1 }
 0x102   : > { %v2368_v14 = vmov %v1919_v22  ;;  %v1921_v63 = vadd.f32 %v397_v49, %v308_v48  }
 0x103   :  { %487 = vst.msk [vmem:[%s2231_s2 + $0x98] sm:$0xff] (%p1968_p0), %vm467_vm0, %v2368_v14 }
 0x104   : > { %v2369_v0 = vmov %v1921_v63 }
 0x105   :  { %472 = vst.msk [vmem:[%s2231_s2 + $0x20] sm:$0xff] (%p1968_p0), %vm467_vm0, %v2369_v0 }
 0x106   : > { %v348_v50 = vpop.f32.mrf.mxu2 }
 0x107   : > { %v437_v51 = vpop.f32.mrf.mxu3 }
 0x108   : > { %v1923_v55 = vadd.f32 %v437_v51, %v348_v50   ;;  %v310_v30 = vpop.f32.mrf.mxu0 }
 0x109   : > { %v399_v52 = vpop.f32.mrf.mxu1 }
 0x10a   : > { %v2370_v1 = vmov %v1923_v55  ;;  %v1925_v61 = vadd.f32 %v399_v52, %v310_v30  }
 0x10b   :  { %488 = vst.msk [vmem:[%s2231_s2 + $0xa0] sm:$0xff] (%p1968_p0), %vm467_vm0, %v2370_v1 }
 0x10c   : > { %v2371_v2 = vmov %v1925_v61 }
 0x10d   :  { %473 = vst.msk [vmem:[%s2231_s2 + $0x28] sm:$0xff] (%p1968_p0), %vm467_vm0, %v2371_v2 }
 0x10e   : > { %v350_v53 = vpop.f32.mrf.mxu2 }
 0x10f   : > { %v439_v54 = vpop.f32.mrf.mxu3 }
 0x110   : > { %v1927_v53 = vadd.f32 %v439_v54, %v350_v53   ;;  %v313_v56 = vpop.f32.mrf.mxu0 }
 0x111   : > { %v402_v57 = vpop.f32.mrf.mxu1 }
 0x112   : > { %v2372_v3 = vmov %v1927_v53  ;;  %v1929_v31 = vadd.f32 %v402_v57, %v313_v56  }
 0x113   :  { %489 = vst.msk [vmem:[%s2231_s2 + $0xa8] sm:$0xff] (%p1968_p0), %vm467_vm0, %v2372_v3 }
 0x114   : > { %v2373_v4 = vmov %v1929_v31 }
 0x115   :  { %474 = vst.msk [vmem:[%s2231_s2 + $0x30] sm:$0xff] (%p1968_p0), %vm467_vm0, %v2373_v4 }
 0x116   : > { %v353_v58 = vpop.f32.mrf.mxu2 }
 0x117   : > { %v442_v59 = vpop.f32.mrf.mxu3 }
 0x118   : > { %v1931_v23 = vadd.f32 %v442_v59, %v353_v58   ;;  %v315_v60 = vpop.f32.mrf.mxu0 }
 0x119   : > { %v404_v62 = vpop.f32.mrf.mxu1 }
 0x11a   : > { %v2374_v5 = vmov %v1931_v23  ;;  %v1933_v29 = vadd.f32 %v404_v62, %v315_v60  }
 0x11b   :  { %490 = vst.msk [vmem:[%s2231_s2 + $0xb0] sm:$0xff] (%p1968_p0), %vm467_vm0, %v2374_v5 }
 0x11c   : > { %v2375_v6 = vmov %v1933_v29 }
 0x11d   :  { %475 = vst.msk [vmem:[%s2231_s2 + $0x38] sm:$0xff] (%p1968_p0), %vm467_vm0, %v2375_v6 }
 0x11e   : > { %v355_v55 = vpop.f32.mrf.mxu2 }
 0x11f   : > { %v444_v63 = vpop.f32.mrf.mxu3 }
 0x120   : > { %v1935_v21 = vadd.f32 %v444_v63, %v355_v55   ;;  %v318_v61 = vpop.f32.mrf.mxu0 }
 0x121   : > { %v407_v17 = vpop.f32.mrf.mxu1 }
 0x122   : > { %v2376_v7 = vmov %v1935_v21  ;;  %v1937_v56 = vadd.f32 %v407_v17, %v318_v61  }
 0x123   :  { %491 = vst.msk [vmem:[%s2231_s2 + $0xb8] sm:$0xff] (%p1968_p0), %vm467_vm0, %v2376_v7 }
 0x124   : > { %v2377_v8 = vmov %v1937_v56 }
 0x125   :  { %476 = vst.msk [vmem:[%s2231_s2 + $0x40] sm:$0xff] (%p1968_p0), %vm467_vm0, %v2377_v8 }
 0x126   : > { %v358_v19 = vpop.f32.mrf.mxu2 }
 0x127   : > { %v447_v25 = vpop.f32.mrf.mxu3 }
 0x128   : > { %v1939_v48 = vadd.f32 %v447_v25, %v358_v19   ;;  %v320_v16 = vpop.f32.mrf.mxu0 }
 0x129   : > { %v409_v18 = vpop.f32.mrf.mxu1 }
 0x12a   : > { %v2378_v9 = vmov %v1939_v48  ;;  %v1941_v58 = vadd.f32 %v409_v18, %v320_v16  }
 0x12b   :  { %492 = vst.msk [vmem:[%s2231_s2 + $0xc0] sm:$0xff] (%p1968_p0), %vm467_vm0, %v2378_v9 }
 0x12c   : > { %v2379_v10 = vmov %v1941_v58 }
 0x12d   :  { %477 = vst.msk [vmem:[%s2231_s2 + $0x48] sm:$0xff] (%p1968_p0), %vm467_vm0, %v2379_v10 }
 0x12e   : > { %v360_v23 = vpop.f32.mrf.mxu2 }
 0x12f   : > { %v449_v20 = vpop.f32.mrf.mxu3 }
 0x130   : > { %v1943_v50 = vadd.f32 %v449_v20, %v360_v23   ;;  %v323_v22 = vpop.f32.mrf.mxu0  ;;  %v2401_v23 = vmov %v2374_v5  ;;  %v2405_v20 = vmov %v2366_v46 }
 0x131   : > { %v412_v24 = vpop.f32.mrf.mxu1 }
 0x132   : > { %v2380_v11 = vmov %v1943_v50  ;;  %v1945_v24 = vadd.f32 %v412_v24, %v323_v22   ;;  %v2404_v22 = vmov %v2368_v14 }
 0x133   :  { %493 = vst.msk [vmem:[%s2231_s2 + $0xc8] sm:$0xff] (%p1968_p0), %vm467_vm0, %v2380_v11 }
 0x134   : > { %v2381_v32 = vmov %v1945_v24 }
 0x135   : > { %v2413_v24 = vmov %v2381_v32  ;;  %478 = vst.msk [vmem:[%s2231_s2 + $0x50] sm:$0xff] (%p1968_p0), %vm467_vm0, %v2381_v32 }
 0x136   : > { %v363_v21 = vpop.f32.mrf.mxu2 }
 0x137   : > { %v452_v26 = vpop.f32.mrf.mxu3 }
 0x138   : > { %v1947_v16 = vadd.f32 %v452_v26, %v363_v21   ;;  %v325_v27 = vpop.f32.mrf.mxu0  ;;  %v2400_v21 = vmov %v2376_v7 }
 0x139   : > { %v414_v28 = vpop.f32.mrf.mxu1 }
 0x13a   : > { %v2382_v33 = vmov %v1947_v16  ;;  %v1949_v26 = vadd.f32 %v414_v28, %v325_v27   ;;  %v2423_v28 = vmov %v2361_v12 }
 0x13b   : > { %v2397_v16 = vmov %v2382_v33  ;;  %494 = vst.msk [vmem:[%s2231_s2 + $0xd0] sm:$0xff] (%p1968_p0), %vm467_vm0, %v2382_v33 }
 0x13c   : > { %v2383_v34 = vmov %v1949_v26 }
 0x13d   : > { %v2412_v26 = vmov %v2383_v34  ;;  %479 = vst.msk [vmem:[%s2231_s2 + $0x58] sm:$0xff] (%p1968_p0), %vm467_vm0, %v2383_v34 }
 0x13e   : > { %v365_v29 = vpop.f32.mrf.mxu2 }
 0x13f   : > { %v454_v31 = vpop.f32.mrf.mxu3 }
 0x140   : > { %v1951_v18 = vadd.f32 %v454_v31, %v365_v29   ;;  %v328_v48 = vpop.f32.mrf.mxu0  ;;  %v2416_v29 = vmov %v2375_v6  ;;  %v2417_v31 = vmov %v2373_v4 }
 0x141   : > { %v417_v49 = vpop.f32.mrf.mxu1 }
 0x142   : > { %v2384_v35 = vmov %v1951_v18  ;;  %v1953_v59 = vadd.f32 %v417_v49, %v328_v48   ;;  %v2399_v48 = vmov %v2378_v9 }
 0x143   : > { %v2396_v18 = vmov %v2384_v35  ;;  %495 = vst.msk [vmem:[%s2231_s2 + $0xd8] sm:$0xff] (%p1968_p0), %vm467_vm0, %v2384_v35 }
 0x144   : > { %v2385_v36 = vmov %v1953_v59 }
 0x145   :  { %480 = vst.msk [vmem:[%s2231_s2 + $0x60] sm:$0xff] (%p1968_p0), %vm467_vm0, %v2385_v36 }
 0x146   : > { %v368_v50 = vpop.f32.mrf.mxu2 }
 0x147   : > { %v457_v51 = vpop.f32.mrf.mxu3 }
 0x148   : > { %v1955_v51 = vadd.f32 %v457_v51, %v368_v50   ;;  %v330_v30 = vpop.f32.mrf.mxu0  ;;  %v2398_v50 = vmov %v2380_v11 }
 0x149   : > { %v419_v52 = vpop.f32.mrf.mxu1 }
 0x14a   : > { %v2386_v37 = vmov %v1955_v51  ;;  %v1957_v57 = vadd.f32 %v419_v52, %v330_v30   ;;  %v2407_v52 = vmov %v2362_v15  ;;  %v2421_v30 = vmov %v2365_v45 }
 0x14b   : > { %v2395_v51 = vmov %v2386_v37  ;;  %496 = vst.msk [vmem:[%s2231_s2 + $0xe0] sm:$0xff] (%p1968_p0), %vm467_vm0, %v2386_v37 }
 0x14c   : > { %v2387_v38 = vmov %v1957_v57 }
 0x14d   : > { %v2410_v57 = vmov %v2387_v38  ;;  %481 = vst.msk [vmem:[%s2231_s2 + $0x68] sm:$0xff] (%p1968_p0), %vm467_vm0, %v2387_v38 }
 0x14e   : > { %v370_v53 = vpop.f32.mrf.mxu2 }
 0x14f   : > { %v459_v54 = vpop.f32.mrf.mxu3 }
 0x150   : > { %v1959_v49 = vadd.f32 %v459_v54, %v370_v53   ;;  %v333_v56 = vpop.f32.mrf.mxu0  ;;  %v2402_v53 = vmov %v2372_v3  ;;  %v2406_v54 = vmov %v2364_v44 }
 0x151   : > { %v422_v58 = vpop.f32.mrf.mxu1 }
 0x152   : > { %v2388_v39 = vmov %v1959_v49  ;;  %v423_v40 = vadd.f32 %v422_v58, %v333_v56   ;;  %v2414_v58 = vmov %v2379_v10  ;;  %v2415_v56 = vmov %v2377_v8 }
 0x153   : > { %v2394_v49 = vmov %v2388_v39  ;;  %497 = vst.msk [vmem:[%s2231_s2 + $0xe8] sm:$0xff] (%p1968_p0), %vm467_vm0, %v2388_v39 }
 0x154   : > { %v2409_v27 = vmov %v423_v40  ;;  %482 = vst.msk [vmem:[%s2231_s2 + $0x70] sm:$0xff] (%p1968_p0), %vm467_vm0, %v423_v40 }
 0x156   : > { %v373_v60 = vpop.f32.mrf.mxu2 }
 0x157   : > { %v462_v62 = vpop.f32.mrf.mxu3 }
 0x158   : > { %v1961_v19 = vadd.f32 %v462_v62, %v373_v60   ;;  %v335_v59 = vpop.f32.mrf.mxu0  ;;  %v2420_v62 = vmov %v2367_v47  ;;  %v2422_v60 = vmov %v2363_v13 }
 0x159   : > { %v424_v55 = vpop.f32.mrf.mxu1 }
 0x15a   : > { %v2389_v41 = vmov %v1961_v19  ;;  %v425_v42 = vadd.f32 %v424_v55, %v335_v59   ;;  %v2403_v55 = vmov %v2370_v1  ;;  %v2411_v59 = vmov %v2385_v36 }
 0x15b   : > { %v2393_v19 = vmov %v2389_v41  ;;  %498 = vst.msk [vmem:[%s2231_s2 + $0xf0] sm:$0xff] (%p1968_p0), %vm467_vm0, %v2389_v41 }
 0x15c   : > { %v2408_v25 = vmov %v425_v42  ;;  %483 = vst.msk [vmem:[%s2231_s2 + $0x78] sm:$0xff] (%p1968_p0), %vm467_vm0, %v425_v42 }
 0x15e   : > { %v375_v63 = vpop.f32.mrf.mxu2 }
 0x15f   : > { %v464_v61 = vpop.f32.mrf.mxu3  ;;  %79 = sbr.rel (!%p1968_p0) target bundleno = 66 (0x42), region = 35 }
 0x160   : > { %v1963_v17 = vadd.f32 %v464_v61, %v375_v63   ;;  %v2418_v61 = vmov %v2371_v2  ;;  %v2419_v63 = vmov %v2369_v0 }
 0x162   : > { %v2390_v43 = vmov %v1963_v17 }
 0x163   : > { %v2392_v17 = vmov %v2390_v43  ;;  %499 = vst.msk [vmem:[%s2231_s2 + $0xf8] sm:$0xff] (%p1968_p0), %vm467_vm0, %v2390_v43 }

</bundles_post_ra>
